<compile_context>
chip_gen: v7x
topology: tpu7x:2x2x1
jax: 0.10.0
libtpu: 0.0.40
codegen_flags: <defaults>
</compile_context>

<pallas_src>
import math
import functools

import jax
import jax.numpy as jnp
import numpy as np
from jax import lax
from jax.experimental import pallas as pl
from jax.experimental.pallas import tpu as pltpu


def _cross_attention_kernel(x_ref, y_ref, wq_ref, wkv_ref, wo_ref, b_ref,
                            o_ref, kv_ref, attn_ref,
                            *, n_heads, d_head, scale, matmul_dtype,
                            approx_recip):
    bb, lqb, e = x_ref.shape          # (batch_block, lq_block, E)
    _, lkv, c = y_ref.shape           # (batch_block, Lkv, C)

    # ---- fused K|V projection: only on the first query tile of each batch
    # ---- block; the result persists in kv_ref across the lq grid axis.
    @pl.when(pl.program_id(1) == 0)
    def _():
        yf = y_ref[...].reshape(bb * lkv, c)                 # (bb*Lkv, C)
        bkv = b_ref[1:2, :]                                  # (1, 2E) = [bk | bv]
        kv = jnp.dot(yf, wkv_ref[...],
                     preferred_element_type=jnp.float32) + bkv
        kv_ref[...] = kv.astype(matmul_dtype)                # (bb*Lkv, 2E)

    # ---- Q projection on the flattened (bb*lq_block, E) slab; fold 1/sqrt(dh).
    xf = x_ref[...].reshape(bb * lqb, e)
    bq = b_ref[0:1, 0:e]
    q = ((jnp.dot(xf, wq_ref[...], preferred_element_type=jnp.float32) + bq)
         * scale).astype(matmul_dtype)                       # (bb*lqb, E)

    # ---- attention per (batch, head).  Each head writes its (lqb, d_head)
    # ---- result into attn_ref at its static lane offset; the out-projection
    # ---- is hoisted out of the loop and done once for the whole block.
    def attend_one_batch(qb, row_q, row_k):
        kvb = kv_ref[pl.ds(row_k, lkv), :]                   # (Lkv, 2E)
        kb = kvb[:, 0:e]
        vb = kvb[:, e:2 * e]
        for h in range(n_heads):
            lo = h * d_head
            # q @ k^T with the transpose folded into the MXU contraction.
            s = lax.dot_general(qb[:, lo:lo + d_head], kb[:, lo:lo + d_head],
                                (((1,), (1,)), ((), ())),
                                preferred_element_type=jnp.float32)  # (lqb, Lkv)
            # Numerically-stable softmax over keys, f32 (matches F.softmax).
            s = s - jnp.max(s, axis=-1, keepdims=True)
            p = jnp.exp(s)
            p = p * pl.reciprocal(jnp.sum(p, axis=-1, keepdims=True),
                                  approx=approx_recip)
            oh = jnp.dot(p.astype(matmul_dtype), vb[:, lo:lo + d_head],
                         preferred_element_type=jnp.float32)         # (lqb, Dh)
            attn_ref[pl.ds(row_q, lqb), pl.ds(lo, d_head)] = oh.astype(matmul_dtype)

    if bb <= 2:
        # Small blocks: static unroll, fully static slices.
        for bi in range(bb):
            attend_one_batch(q[bi * lqb:(bi + 1) * lqb, :], bi * lqb, bi * lkv)
    else:
        # Larger blocks: fori_loop bounds live ranges (64 vregs; avoid spills).
        def body(bi, carry):
            row_q = pl.multiple_of(bi * lqb, lqb)
            row_k = pl.multiple_of(bi * lkv, lkv)
            qb = lax.dynamic_slice(q, (row_q, 0), (lqb, e))
            attend_one_batch(qb, row_q, row_k)
            return carry
        lax.fori_loop(0, bb, body, 0)

    # ---- single (bb*lqb, E) @ (E, E) out-projection, single lane-dense store.
    bo = b_ref[0:1, e:2 * e]
    out = jnp.dot(attn_ref[...], wo_ref[...],
                  preferred_element_type=jnp.float32) + bo
    o_ref[...] = out.reshape(bb, lqb, e).astype(o_ref.dtype)


def cross_attention(x, y, params, n_heads, *,
                    matmul_dtype=jnp.bfloat16, batch_block=None, lq_block=None,
                    vmem_limit_bytes=32 * 1024 * 1024):
    """x: (B, Lq, E) f32, y: (B, Lkv, C) f32. Returns (B, Lq, E) f32."""
    B, Lq, E = x.shape
    By, Lkv, C = y.shape
    assert By == B
    assert E % n_heads == 0, "d_embed must be divisible by n_heads"
    d_head = E // n_heads

    # --- query-axis tile: keeps the per-step working set inside v7x's 32 MiB
    # --- scoped VMEM at production Lq (no-op at small Lq).
    if lq_block is None:
        if Lq <= 512:
            lq_block = Lq
        else:
            lq_block = max((d for d in range(8, 513, 8) if Lq % d == 0),
                           default=Lq)
    if Lq % lq_block != 0:
        raise ValueError(f"lq_block={lq_block} must divide Lq={Lq}")
    if lq_block != Lq and lq_block % 8 != 0:
        raise ValueError("lq_block must be a multiple of 8 when tiling Lq")
    num_lq_blocks = Lq // lq_block

    # --- batch-axis tile: prefer >= 4 batch grid steps (>= 2 per v7x
    # --- TensorCore) so the pipeline has something to overlap; among those,
    # --- use the smallest block that still feeds >= 256 rows to the MXU.
    if batch_block is None:
        divisors = [d for d in range(1, B + 1) if B % d == 0]
        cands = [d for d in divisors if B // d >= 4]
        if cands:
            good = [d for d in cands if d * lq_block >= 256]
            batch_block = min(good) if good else max(cands)
        else:
            batch_block = 1
    if B % batch_block != 0:
        raise ValueError(f"batch_block={batch_block} must divide B={B}")
    num_batch_blocks = B // batch_block

    # nn.Linear weight is (out, in); pre-transpose so the kernel does x @ W.
    # Fuse Wk|Wv into one (C, 2E) weight; cast weights once to the MXU dtype.
    wq_t = params["wq"].T.astype(matmul_dtype)                         # (E, E)
    wkv_t = jnp.concatenate([params["wk"].T, params["wv"].T],
                            axis=1).astype(matmul_dtype)               # (C, 2E)
    wo_t = params["wo"].T.astype(matmul_dtype)                         # (E, E)
    # Fused biases, one (2, 2E) f32 DMA: row0 = [bq | bo], row1 = [bk | bv].
    biases = jnp.stack([jnp.concatenate([params["bq"], params["bo"]]),
                        jnp.concatenate([params["bk"], params["bv"]])],
                       axis=0).astype(jnp.float32)

    # Cast activations in the wrapper (halves streamed DMA on the bf16 path).
    x_in = x.astype(matmul_dtype)
    y_in = y.astype(matmul_dtype)

    use_approx = np.dtype(matmul_dtype) != np.dtype(np.float32)

    kernel = functools.partial(
        _cross_attention_kernel,
        n_heads=n_heads, d_head=d_head, scale=1.0 / math.sqrt(d_head),
        matmul_dtype=matmul_dtype, approx_recip=use_approx)

    # Advisory cost estimate for XLA's scheduler.
    flops = 2 * B * (Lq * E * E                 # Q projection
                     + Lkv * C * 2 * E          # fused K/V projection
                     + 2 * Lq * Lkv * E         # q@k^T and p@v
                     + Lq * E * E)              # out projection
    transcendentals = B * n_heads * Lq * Lkv
    act_b = np.dtype(matmul_dtype).itemsize
    bytes_accessed = int((x.size + y.size) * act_b
                         + B * Lq * E * 4
                         + (wq_t.size + wkv_t.size + wo_t.size) * act_b
                         + biases.size * 4)
    cost = pl.CostEstimate(flops=int(flops),
                           transcendentals=int(transcendentals),
                           bytes_accessed=bytes_accessed)

    grid_spec = pltpu.PrefetchScalarGridSpec(
        num_scalar_prefetch=0,
        grid=(num_batch_blocks, num_lq_blocks),
        in_specs=[
            pl.BlockSpec((batch_block, lq_block, E), lambda b, l: (b, l, 0)),  # x
            pl.BlockSpec((batch_block, Lkv, C), lambda b, l: (b, 0, 0)),       # y
            pl.BlockSpec((E, E), lambda b, l: (0, 0)),                         # Wq^T
            pl.BlockSpec((C, 2 * E), lambda b, l: (0, 0)),                     # [Wk|Wv]^T
            pl.BlockSpec((E, E), lambda b, l: (0, 0)),                         # Wo^T
            pl.BlockSpec((2, 2 * E), lambda b, l: (0, 0)),                     # fused biases
        ],
        out_specs=pl.BlockSpec((batch_block, lq_block, E), lambda b, l: (b, l, 0)),
        scratch_shapes=[
            pltpu.VMEM((batch_block * Lkv, 2 * E), matmul_dtype),   # cached K|V
            pltpu.VMEM((batch_block * lq_block, E), matmul_dtype),  # head-concat buffer
        ],
    )

    return pl.pallas_call(
        kernel,
        out_shape=jax.ShapeDtypeStruct((B, Lq, E), jnp.float32),
        grid_spec=grid_spec,
        compiler_params=pltpu.CompilerParams(
            dimension_semantics=("parallel", "arbitrary"),
            vmem_limit_bytes=vmem_limit_bytes),
        cost_estimate=cost,
    )(x_in, y_in, wq_t, wkv_t, wo_t, biases)


def cross_attention_ref(x, y, params, n_heads):
    """Pure-JAX reference mirroring the PyTorch forward exactly (f32)."""
    B, Lq, E = x.shape
    d_head = E // n_heads
    q = x @ params["wq"].T + params["bq"]
    k = y @ params["wk"].T + params["bk"]
    v = y @ params["wv"].T + params["bv"]
    q = q.reshape(B, Lq, n_heads, d_head).transpose(0, 2, 1, 3)
    k = k.reshape(B, -1, n_heads, d_head).transpose(0, 2, 1, 3)
    v = v.reshape(B, -1, n_heads, d_head).transpose(0, 2, 1, 3)
    w = (q @ jnp.swapaxes(k, -1, -2)) / math.sqrt(d_head)
    w = jax.nn.softmax(w, axis=-1)
    o = w @ v
    o = o.transpose(0, 2, 1, 3).reshape(B, Lq, E)
    return o @ params["wo"].T + params["bo"]


if __name__ == "__main__":
    n_heads, d_embed, d_cross = 4, 32, 24

    key = jax.random.PRNGKey(0)
    ks = jax.random.split(key, 8)
    s = 0.1
    params = {
        "wq": s * jax.random.normal(ks[0], (d_embed, d_embed), jnp.float32),
        "bq": s * jax.random.normal(ks[1], (d_embed,), jnp.float32),
        "wk": s * jax.random.normal(ks[2], (d_embed, d_cross), jnp.float32),
        "bk": s * jax.random.normal(ks[3], (d_embed,), jnp.float32),
        "wv": s * jax.random.normal(ks[4], (d_embed, d_cross), jnp.float32),
        "bv": s * jax.random.normal(ks[5], (d_embed,), jnp.float32),
        "wo": s * jax.random.normal(ks[6], (d_embed, d_embed), jnp.float32),
        "bo": s * jax.random.normal(ks[7], (d_embed,), jnp.float32),
    }

    def run_case(B, Lq, Lkv, matmul_dtype, batch_block, lq_block,
                 rtol, atol, seed):
        kx, ky = jax.random.split(jax.random.PRNGKey(seed))
        x = jax.random.normal(kx, (B, Lq, d_embed), jnp.float32)
        y = jax.random.normal(ky, (B, Lkv, d_cross), jnp.float32)
        out = cross_attention(x, y, params, n_heads,
                              matmul_dtype=matmul_dtype,
                              batch_block=batch_block, lq_block=lq_block)
        out = jax.block_until_ready(out)
        ref = cross_attention_ref(x, y, params, n_heads)
        np.testing.assert_allclose(np.asarray(out), np.asarray(ref),
                                   rtol=rtol, atol=atol)

    # f32 MXU path, tight numeric check (2 batch grid steps x 1 query tile).
    run_case(B=2, Lq=16, Lkv=8, matmul_dtype=jnp.float32, batch_block=None,
             lq_block=None, rtol=2e-5, atol=2e-5, seed=1)
    # Default bf16 MXU path (f32 accumulation + f32 softmax).
    run_case(B=2, Lq=16, Lkv=8, matmul_dtype=jnp.bfloat16, batch_block=None,
             lq_block=None, rtol=2e-2, atol=2e-2, seed=2)
    # Query-axis tiling + persistent K/V scratch (2 query tiles per batch block).
    run_case(B=4, Lq=32, Lkv=8, matmul_dtype=jnp.bfloat16, batch_block=None,
             lq_block=16, rtol=2e-2, atol=2e-2, seed=3)
    # batch_block > 2 -> lax.fori_loop per-batch path, flattened-batch projections.
    run_case(B=8, Lq=16, Lkv=8, matmul_dtype=jnp.bfloat16, batch_block=4,
             lq_block=None, rtol=2e-2, atol=2e-2, seed=4)

    print("KERNEL_OK")
</pallas_src>

<mosaic_0001>
module attributes {stable_mosaic.version = 11 : i64} {
  func.func @_cross_attention_kernel(%arg0: i32, %arg1: i32, %arg2: memref<1x16x32xf32, #tpu.memory_space<vmem>>, %arg3: memref<1x8x24xf32, #tpu.memory_space<vmem>>, %arg4: memref<32x32xf32, #tpu.memory_space<vmem>>, %arg5: memref<24x64xf32, #tpu.memory_space<vmem>>, %arg6: memref<32x32xf32, #tpu.memory_space<vmem>>, %arg7: memref<2x64xf32, #tpu.memory_space<vmem>>, %arg8: memref<1x16x32xf32, #tpu.memory_space<vmem>>, %arg9: memref<8x64xf32, #tpu.memory_space<vmem>>, %arg10: memref<16x32xf32, #tpu.memory_space<vmem>>) attributes {dimension_semantics = [#tpu.dimension_semantics<parallel>, #tpu.dimension_semantics<arbitrary>], iteration_bounds = array<i64: 2, 1>, scalar_prefetch = 0 : i64, scratch_operands = 2 : i64, tpu.core_type = #tpu.core_type<tc>, window_params = [{transform_indices = @transform_0, window_bounds = array<i64: 1, 16, 32>}, {transform_indices = @transform_1, window_bounds = array<i64: 1, 8, 24>}, {pipeline_mode = #tpu.pipeline_mode<synchronous>, transform_indices = @transform_2, window_bounds = array<i64: 32, 32>}, {pipeline_mode = #tpu.pipeline_mode<synchronous>, transform_indices = @transform_3, window_bounds = array<i64: 24, 64>}, {pipeline_mode = #tpu.pipeline_mode<synchronous>, transform_indices = @transform_4, window_bounds = array<i64: 32, 32>}, {pipeline_mode = #tpu.pipeline_mode<synchronous>, transform_indices = @transform_5, window_bounds = array<i64: 2, 64>}, {transform_indices = @transform_6, window_bounds = array<i64: 1, 16, 32>}]} {
    %c0_i32 = arith.constant 0 : i32
    %0 = arith.cmpi eq, %arg1, %c0_i32 : i32
    %1 = arith.extui %0 : i1 to i32
    %c0_i32_0 = arith.constant 0 : i32
    %2 = arith.cmpi ne, %1, %c0_i32_0 : i32
    scf.if %2 {
      %c0_40 = arith.constant 0 : index
      %c0_41 = arith.constant 0 : index
      %c0_42 = arith.constant 0 : index
      %87 = vector.load %arg3[%c0_40, %c0_41, %c0_42] : memref<1x8x24xf32, #tpu.memory_space<vmem>>, vector<1x8x24xf32>
      %88 = vector.shape_cast %87 : vector<1x8x24xf32> to vector<8x24xf32>
      %c1 = arith.constant 1 : index
      %c0_43 = arith.constant 0 : index
      %89 = vector.load %arg7[%c1, %c0_43] : memref<2x64xf32, #tpu.memory_space<vmem>>, vector<1x64xf32>
      %c0_44 = arith.constant 0 : index
      %c0_45 = arith.constant 0 : index
      %90 = vector.load %arg5[%c0_44, %c0_45] : memref<24x64xf32, #tpu.memory_space<vmem>>, vector<24x64xf32>
      %cst_46 = arith.constant dense<0.000000e+00> : vector<8x64xf32>
      %91 = tpu.matmul %88, %90, %cst_46 {dimension_numbers = #tpu.dot_dimension_numbers<[1], [0], [0], [1], [0, 0, 1, 1], [], []>} : vector<8x24xf32>, vector<24x64xf32>, vector<8x64xf32> -> vector<8x64xf32>
      %92 = vector.broadcast %89 : vector<1x64xf32> to vector<8x64xf32>
      %93 = arith.addf %91, %92 : vector<8x64xf32>
      %c0_47 = arith.constant 0 : index
      %c0_48 = arith.constant 0 : index
      %94 = vector.load %arg9[%c0_47, %c0_48] : memref<8x64xf32, #tpu.memory_space<vmem>>, vector<8x64xf32>
      tpu.vector_store %arg9[%c0_47, %c0_48], %93 {strides = array<i32>} : memref<8x64xf32, #tpu.memory_space<vmem>>, vector<8x64xf32>,
    } else {
    }
    %c0 = arith.constant 0 : index
    %c0_1 = arith.constant 0 : index
    %c0_2 = arith.constant 0 : index
    %3 = vector.load %arg2[%c0, %c0_1, %c0_2] : memref<1x16x32xf32, #tpu.memory_space<vmem>>, vector<1x16x32xf32>
    %4 = vector.shape_cast %3 : vector<1x16x32xf32> to vector<16x32xf32>
    %c0_3 = arith.constant 0 : index
    %c0_4 = arith.constant 0 : index
    %5 = vector.load %arg7[%c0_3, %c0_4] : memref<2x64xf32, #tpu.memory_space<vmem>>, vector<1x32xf32>
    %c0_5 = arith.constant 0 : index
    %c0_6 = arith.constant 0 : index
    %6 = vector.load %arg4[%c0_5, %c0_6] : memref<32x32xf32, #tpu.memory_space<vmem>>, vector<32x32xf32>
    %cst = arith.constant dense<0.000000e+00> : vector<16x32xf32>
    %7 = tpu.matmul %4, %6, %cst {dimension_numbers = #tpu.dot_dimension_numbers<[1], [0], [0], [1], [0, 0, 1, 1], [], []>} : vector<16x32xf32>, vector<32x32xf32>, vector<16x32xf32> -> vector<16x32xf32>
    %8 = vector.broadcast %5 : vector<1x32xf32> to vector<16x32xf32>
    %9 = arith.addf %7, %8 : vector<16x32xf32>
    %cst_7 = arith.constant 0.353553385 : f32
    %10 = vector.broadcast %cst_7 : f32 to vector<16x32xf32>
    %11 = arith.mulf %9, %10 : vector<16x32xf32>
    %c0_8 = arith.constant 0 : index
    %c0_9 = arith.constant 0 : index
    %12 = vector.load %arg9[%c0_8, %c0_9] : memref<8x64xf32, #tpu.memory_space<vmem>>, vector<8x64xf32>
    %13 = vector.extract_strided_slice %12 {offsets = [0, 0], sizes = [8, 32], strides = [1, 1]} : vector<8x64xf32> to vector<8x32xf32>
    %14 = vector.extract_strided_slice %12 {offsets = [0, 32], sizes = [8, 32], strides = [1, 1]} : vector<8x64xf32> to vector<8x32xf32>
    %15 = vector.extract_strided_slice %11 {offsets = [0, 0], sizes = [16, 8], strides = [1, 1]} : vector<16x32xf32> to vector<16x8xf32>
    %16 = vector.extract_strided_slice %13 {offsets = [0, 0], sizes = [8, 8], strides = [1, 1]} : vector<8x32xf32> to vector<8x8xf32>
    %cst_10 = arith.constant dense<0.000000e+00> : vector<16x8xf32>
    %17 = tpu.matmul %15, %16, %cst_10 {dimension_numbers = #tpu.dot_dimension_numbers<[1], [1], [0], [0], [0, 0, 1, 0], [], []>} : vector<16x8xf32>, vector<8x8xf32>, vector<16x8xf32> -> vector<16x8xf32>
    %cst_11 = arith.constant dense<0xFF800000> : vector<16xf32>
    %18 = vector.multi_reduction <maximumf>, %17, %cst_11 [1] : vector<16x8xf32> to vector<16xf32>
    %19 = vector.shape_cast %18 : vector<16xf32> to vector<16x1xf32>
    %20 = vector.broadcast %19 : vector<16x1xf32> to vector<16x8xf32>
    %21 = arith.subf %17, %20 : vector<16x8xf32>
    %22 = math.exp %21 : vector<16x8xf32>
    %cst_12 = arith.constant dense<0.000000e+00> : vector<16xf32>
    %23 = vector.multi_reduction <add>, %22, %cst_12 [1] : vector<16x8xf32> to vector<16xf32>
    %24 = vector.shape_cast %23 : vector<16xf32> to vector<16x1xf32>
    %25 = tpu.reciprocal %24 : vector<16x1xf32> -> vector<16x1xf32>
    %26 = vector.broadcast %25 : vector<16x1xf32> to vector<16x8xf32>
    %27 = arith.mulf %22, %26 : vector<16x8xf32>
    %28 = vector.extract_strided_slice %14 {offsets = [0, 0], sizes = [8, 8], strides = [1, 1]} : vector<8x32xf32> to vector<8x8xf32>
    %cst_13 = arith.constant dense<0.000000e+00> : vector<16x8xf32>
    %29 = tpu.matmul %27, %28, %cst_13 {dimension_numbers = #tpu.dot_dimension_numbers<[1], [0], [0], [1], [0, 0, 1, 1], [], []>} : vector<16x8xf32>, vector<8x8xf32>, vector<16x8xf32> -> vector<16x8xf32>
    %c0_14 = arith.constant 0 : index
    %c0_15 = arith.constant 0 : index
    %30 = vector.load %arg10[%c0_14, %c0_15] : memref<16x32xf32, #tpu.memory_space<vmem>>, vector<16x8xf32>
    tpu.vector_store %arg10[%c0_14, %c0_15], %29 {strides = array<i32>} : memref<16x32xf32, #tpu.memory_space<vmem>>, vector<16x8xf32>,
    %31 = vector.extract_strided_slice %11 {offsets = [0, 8], sizes = [16, 8], strides = [1, 1]} : vector<16x32xf32> to vector<16x8xf32>
    %32 = vector.extract_strided_slice %13 {offsets = [0, 8], sizes = [8, 8], strides = [1, 1]} : vector<8x32xf32> to vector<8x8xf32>
    %cst_16 = arith.constant dense<0.000000e+00> : vector<16x8xf32>
    %33 = tpu.matmul %31, %32, %cst_16 {dimension_numbers = #tpu.dot_dimension_numbers<[1], [1], [0], [0], [0, 0, 1, 0], [], []>} : vector<16x8xf32>, vector<8x8xf32>, vector<16x8xf32> -> vector<16x8xf32>
    %cst_17 = arith.constant dense<0xFF800000> : vector<16xf32>
    %34 = vector.multi_reduction <maximumf>, %33, %cst_17 [1] : vector<16x8xf32> to vector<16xf32>
    %35 = vector.shape_cast %34 : vector<16xf32> to vector<16x1xf32>
    %36 = vector.broadcast %35 : vector<16x1xf32> to vector<16x8xf32>
    %37 = arith.subf %33, %36 : vector<16x8xf32>
    %38 = math.exp %37 : vector<16x8xf32>
    %cst_18 = arith.constant dense<0.000000e+00> : vector<16xf32>
    %39 = vector.multi_reduction <add>, %38, %cst_18 [1] : vector<16x8xf32> to vector<16xf32>
    %40 = vector.shape_cast %39 : vector<16xf32> to vector<16x1xf32>
    %41 = tpu.reciprocal %40 : vector<16x1xf32> -> vector<16x1xf32>
    %42 = vector.broadcast %41 : vector<16x1xf32> to vector<16x8xf32>
    %43 = arith.mulf %38, %42 : vector<16x8xf32>
    %44 = vector.extract_strided_slice %14 {offsets = [0, 8], sizes = [8, 8], strides = [1, 1]} : vector<8x32xf32> to vector<8x8xf32>
    %cst_19 = arith.constant dense<0.000000e+00> : vector<16x8xf32>
    %45 = tpu.matmul %43, %44, %cst_19 {dimension_numbers = #tpu.dot_dimension_numbers<[1], [0], [0], [1], [0, 0, 1, 1], [], []>} : vector<16x8xf32>, vector<8x8xf32>, vector<16x8xf32> -> vector<16x8xf32>
    %c0_20 = arith.constant 0 : index
    %c8 = arith.constant 8 : index
    %46 = vector.load %arg10[%c0_20, %c8] : memref<16x32xf32, #tpu.memory_space<vmem>>, vector<16x8xf32>
    tpu.vector_store %arg10[%c0_20, %c8], %45 {strides = array<i32>} : memref<16x32xf32, #tpu.memory_space<vmem>>, vector<16x8xf32>,
    %47 = vector.extract_strided_slice %11 {offsets = [0, 16], sizes = [16, 8], strides = [1, 1]} : vector<16x32xf32> to vector<16x8xf32>
    %48 = vector.extract_strided_slice %13 {offsets = [0, 16], sizes = [8, 8], strides = [1, 1]} : vector<8x32xf32> to vector<8x8xf32>
    %cst_21 = arith.constant dense<0.000000e+00> : vector<16x8xf32>
    %49 = tpu.matmul %47, %48, %cst_21 {dimension_numbers = #tpu.dot_dimension_numbers<[1], [1], [0], [0], [0, 0, 1, 0], [], []>} : vector<16x8xf32>, vector<8x8xf32>, vector<16x8xf32> -> vector<16x8xf32>
    %cst_22 = arith.constant dense<0xFF800000> : vector<16xf32>
    %50 = vector.multi_reduction <maximumf>, %49, %cst_22 [1] : vector<16x8xf32> to vector<16xf32>
    %51 = vector.shape_cast %50 : vector<16xf32> to vector<16x1xf32>
    %52 = vector.broadcast %51 : vector<16x1xf32> to vector<16x8xf32>
    %53 = arith.subf %49, %52 : vector<16x8xf32>
    %54 = math.exp %53 : vector<16x8xf32>
    %cst_23 = arith.constant dense<0.000000e+00> : vector<16xf32>
    %55 = vector.multi_reduction <add>, %54, %cst_23 [1] : vector<16x8xf32> to vector<16xf32>
    %56 = vector.shape_cast %55 : vector<16xf32> to vector<16x1xf32>
    %57 = tpu.reciprocal %56 : vector<16x1xf32> -> vector<16x1xf32>
    %58 = vector.broadcast %57 : vector<16x1xf32> to vector<16x8xf32>
    %59 = arith.mulf %54, %58 : vector<16x8xf32>
    %60 = vector.extract_strided_slice %14 {offsets = [0, 16], sizes = [8, 8], strides = [1, 1]} : vector<8x32xf32> to vector<8x8xf32>
    %cst_24 = arith.constant dense<0.000000e+00> : vector<16x8xf32>
    %61 = tpu.matmul %59, %60, %cst_24 {dimension_numbers = #tpu.dot_dimension_numbers<[1], [0], [0], [1], [0, 0, 1, 1], [], []>} : vector<16x8xf32>, vector<8x8xf32>, vector<16x8xf32> -> vector<16x8xf32>
    %c0_25 = arith.constant 0 : index
    %c16 = arith.constant 16 : index
    %62 = vector.load %arg10[%c0_25, %c16] : memref<16x32xf32, #tpu.memory_space<vmem>>, vector<16x8xf32>
    tpu.vector_store %arg10[%c0_25, %c16], %61 {strides = array<i32>} : memref<16x32xf32, #tpu.memory_space<vmem>>, vector<16x8xf32>,
    %63 = vector.extract_strided_slice %11 {offsets = [0, 24], sizes = [16, 8], strides = [1, 1]} : vector<16x32xf32> to vector<16x8xf32>
    %64 = vector.extract_strided_slice %13 {offsets = [0, 24], sizes = [8, 8], strides = [1, 1]} : vector<8x32xf32> to vector<8x8xf32>
    %cst_26 = arith.constant dense<0.000000e+00> : vector<16x8xf32>
    %65 = tpu.matmul %63, %64, %cst_26 {dimension_numbers = #tpu.dot_dimension_numbers<[1], [1], [0], [0], [0, 0, 1, 0], [], []>} : vector<16x8xf32>, vector<8x8xf32>, vector<16x8xf32> -> vector<16x8xf32>
    %cst_27 = arith.constant dense<0xFF800000> : vector<16xf32>
    %66 = vector.multi_reduction <maximumf>, %65, %cst_27 [1] : vector<16x8xf32> to vector<16xf32>
    %67 = vector.shape_cast %66 : vector<16xf32> to vector<16x1xf32>
    %68 = vector.broadcast %67 : vector<16x1xf32> to vector<16x8xf32>
    %69 = arith.subf %65, %68 : vector<16x8xf32>
    %70 = math.exp %69 : vector<16x8xf32>
    %cst_28 = arith.constant dense<0.000000e+00> : vector<16xf32>
    %71 = vector.multi_reduction <add>, %70, %cst_28 [1] : vector<16x8xf32> to vector<16xf32>
    %72 = vector.shape_cast %71 : vector<16xf32> to vector<16x1xf32>
    %73 = tpu.reciprocal %72 : vector<16x1xf32> -> vector<16x1xf32>
    %74 = vector.broadcast %73 : vector<16x1xf32> to vector<16x8xf32>
    %75 = arith.mulf %70, %74 : vector<16x8xf32>
    %76 = vector.extract_strided_slice %14 {offsets = [0, 24], sizes = [8, 8], strides = [1, 1]} : vector<8x32xf32> to vector<8x8xf32>
    %cst_29 = arith.constant dense<0.000000e+00> : vector<16x8xf32>
    %77 = tpu.matmul %75, %76, %cst_29 {dimension_numbers = #tpu.dot_dimension_numbers<[1], [0], [0], [1], [0, 0, 1, 1], [], []>} : vector<16x8xf32>, vector<8x8xf32>, vector<16x8xf32> -> vector<16x8xf32>
    %c0_30 = arith.constant 0 : index
    %c24 = arith.constant 24 : index
    %78 = vector.load %arg10[%c0_30, %c24] : memref<16x32xf32, #tpu.memory_space<vmem>>, vector<16x8xf32>
    tpu.vector_store %arg10[%c0_30, %c24], %77 {strides = array<i32>} : memref<16x32xf32, #tpu.memory_space<vmem>>, vector<16x8xf32>,
    %c0_31 = arith.constant 0 : index
    %c32 = arith.constant 32 : index
    %79 = vector.load %arg7[%c0_31, %c32] : memref<2x64xf32, #tpu.memory_space<vmem>>, vector<1x32xf32>
    %c0_32 = arith.constant 0 : index
    %c0_33 = arith.constant 0 : index
    %80 = vector.load %arg10[%c0_32, %c0_33] : memref<16x32xf32, #tpu.memory_space<vmem>>, vector<16x32xf32>
    %c0_34 = arith.constant 0 : index
    %c0_35 = arith.constant 0 : index
    %81 = vector.load %arg6[%c0_34, %c0_35] : memref<32x32xf32, #tpu.memory_space<vmem>>, vector<32x32xf32>
    %cst_36 = arith.constant dense<0.000000e+00> : vector<16x32xf32>
    %82 = tpu.matmul %80, %81, %cst_36 {dimension_numbers = #tpu.dot_dimension_numbers<[1], [0], [0], [1], [0, 0, 1, 1], [], []>} : vector<16x32xf32>, vector<32x32xf32>, vector<16x32xf32> -> vector<16x32xf32>
    %83 = vector.broadcast %79 : vector<1x32xf32> to vector<16x32xf32>
    %84 = arith.addf %82, %83 : vector<16x32xf32>
    %85 = vector.shape_cast %84 : vector<16x32xf32> to vector<1x16x32xf32>
    %c0_37 = arith.constant 0 : index
    %c0_38 = arith.constant 0 : index
    %c0_39 = arith.constant 0 : index
    %86 = vector.load %arg8[%c0_37, %c0_38, %c0_39] : memref<1x16x32xf32, #tpu.memory_space<vmem>>, vector<1x16x32xf32>
    tpu.vector_store %arg8[%c0_37, %c0_38, %c0_39], %85 {strides = array<i32>} : memref<1x16x32xf32, #tpu.memory_space<vmem>>, vector<1x16x32xf32>,
    return
  }
  func.func @transform_0(%arg0: i32, %arg1: i32) -> (i32, i32, i32) {
    %c0_i32 = arith.constant 0 : i32
    %c0_i32_0 = arith.constant 0 : i32
    return %arg0, %arg1, %c0_i32 : i32, i32, i32
  }
  func.func @transform_1(%arg0: i32, %arg1: i32) -> (i32, i32, i32) {
    %c0_i32 = arith.constant 0 : i32
    %c0_i32_0 = arith.constant 0 : i32
    %c0_i32_1 = arith.constant 0 : i32
    return %arg0, %c0_i32, %c0_i32_0 : i32, i32, i32
  }
  func.func @transform_2(%arg0: i32, %arg1: i32) -> (i32, i32) {
    %c0_i32 = arith.constant 0 : i32
    %c0_i32_0 = arith.constant 0 : i32
    %c0_i32_1 = arith.constant 0 : i32
    return %c0_i32, %c0_i32_0 : i32, i32
  }
  func.func @transform_3(%arg0: i32, %arg1: i32) -> (i32, i32) {
    %c0_i32 = arith.constant 0 : i32
    %c0_i32_0 = arith.constant 0 : i32
    %c0_i32_1 = arith.constant 0 : i32
    return %c0_i32, %c0_i32_0 : i32, i32
  }
  func.func @transform_4(%arg0: i32, %arg1: i32) -> (i32, i32) {
    %c0_i32 = arith.constant 0 : i32
    %c0_i32_0 = arith.constant 0 : i32
    %c0_i32_1 = arith.constant 0 : i32
    return %c0_i32, %c0_i32_0 : i32, i32
  }
  func.func @transform_5(%arg0: i32, %arg1: i32) -> (i32, i32) {
    %c0_i32 = arith.constant 0 : i32
    %c0_i32_0 = arith.constant 0 : i32
    %c0_i32_1 = arith.constant 0 : i32
    return %c0_i32, %c0_i32_0 : i32, i32
  }
  func.func @transform_6(%arg0: i32, %arg1: i32) -> (i32, i32, i32) {
    %c0_i32 = arith.constant 0 : i32
    %c0_i32_0 = arith.constant 0 : i32
    return %arg0, %arg1, %c0_i32 : i32, i32, i32
  }
}

</mosaic_0001>

<bundles_post_ra>
// kernel: tpu_custom_call.1
= control target key start
LH: loop header
LB: loop body
LE: loop exit
PB: predicated region body
PF: predicated region fallthrough
CT: control target
= control target key end

     0   :  { %s2654_s0 = inlined_call_operand.hbm [shape: f32[2,16,32], index: 0, kind: input, shape index: {}]   ;;  %s2655_s1 = inlined_call_operand.hbm [shape: f32[2,8,24], index: 1, kind: input, shape index: {}]   ;;  %s2656_s2 = inlined_call_operand.hbm [shape: f32[32,32], index: 2, kind: input, shape index: {}]   ;;  %s2657_s3 = inlined_call_operand.hbm [shape: f32[24,64], index: 3, kind: input, shape index: {}]   ;;  %s2658_s4 = inlined_call_operand.hbm [shape: f32[32,32], index: 4, kind: input, shape index: {}]   ;;  %s2659_s5 = inlined_call_operand.vmem [shape: f32[2,64], index: 5, kind: input, shape index: {}]   ;;  %s2660_s6 = inlined_call_operand.hbm [shape: f32[2,16,32], index: 6, kind: output, shape index: {}]  }
   0x1   :  { %2669 = sst [smem:[#allocation21_spill]] %s2654_s0 }
   0x2   :  { %2670 = sst [smem:[#allocation22_spill]] %s2656_s2 }
   0x3   :  { %2671 = sst [smem:[#allocation23_spill]] %s2657_s3 }
   0x4   :  { %2672 = sst [smem:[#allocation24_spill]] %s2658_s4 }
   0x5   :  { %11 = vsyncpa [#allocation5], 0 }
   0x6   :  { %13 = vsyncpa [#allocation5 + $0x1], 0 }
   0x7   :  { %14 = vsyncpa [#allocation8], 0 }
   0x8   :  { %16 = vsyncpa [#allocation8 + $0x1], 0 }
   0x9   :  { %17 = vsyncpa [#allocation11], 0 }
   0xa   :  { %18 = vsyncpa [#allocation6], 0 }
   0xb   :  { %20 = vsyncpa [#allocation6 + $0x1], 0  ;;  %s2239_s21 = smov 0   ;;  %s2241_s22 = smov 0  }
   0xc   :  { %s2243_s23 = smov 0   ;;  %s2245_s24 = smov 0  }
   0xd   :  { %s2247_s25 = smov 0   ;;  %s2249_s26 = smov 0  }
   0xe LB: > { %2673 = sst [smem:[#allocation19_spill]] %s2160_s21  ;;  %s2270_s27 = sadd.s32 4294967295, %s2180_s26   ;;  %s2180_s26 = sphi %s2249_s26, %s26_s26   ;;  %s2176_s25 = sphi %s2247_s25, %s2705_s25   ;;  %s2172_s24 = sphi %s2245_s24, %s2704_s24   ;;  %s2168_s23 = sphi %s2243_s23, %s2703_s23   ;;  %s2164_s22 = sphi %s2241_s22, %s2702_s22   ;;  %s2160_s21 = sphi %s2239_s21, %s2701_s21  }
   0xf   : > { %s1613_s28 = sadd.s32 4294967294, %s2180_s26   ;;  %p60_p0 = scmp.ne.s32.totalorder %s2164_s22, %s2160_s21 }
  0x10   : > { %p2661_p1 = scmp.eq.s32.totalorder %s2270_s27, 0  ;;  %p202_p3 = scmp.eq.s32.totalorder %s1613_s28, 1 }
  0x11   : > { %p1614_p5 = scmp.ge.s32.totalorder %s2180_s26, 1  ;;  %p209_p7 = scmp.lt.s32.totalorder %s2180_s26, 3 }
  0x12   : > { %p2279_p4 = por %p2661_p1, %p60_p0  ;;  %p2284_p6 = por %p202_p3, %p60_p0 }
  0x13   : > { %p2289_p8 = pnand %p1614_p5, %p209_p7  ;;  %s2182_s8 = smov [#allocation9]  }
  0x14   : > { %s2674_s29 = scalar_select %p2279_p4, 1, 0 }
  0x15   : > { %s2675_s30 = scalar_select %p2284_p6, 1, 0 }
  0x16   : > { %s2677_s7 = scalar_select %p2289_p8, 1, 0 }
  0x17   : > { %2676 = sst [smem:[#allocation20_spill]] %s2675_s30  ;;  %s221_s9 = sshll.u32 %s2182_s8, 4  ;;  %s2293_s9 = int_to_ptr.vmem [resolvable:$true] %s221_s9 }
  0x18   : > { %p1814_p9 = pneg %p2289_p8  ;;  %s2183_s11 = smov [#allocation10]  }
  0x19   : > { %s234_s12 = sshll.u32 %s2183_s11, 4  ;;  %s2184_s13 = smov [#allocation12]   ;;  %s2304_s12 = int_to_ptr.vmem [resolvable:$true] %s234_s12 }
  0x1a   : > { %p2300_p11 = pnand %p1814_p9, %p2661_p1  ;;  %s2306_s14 = sshll.u32 %s2184_s13, 4  ;;  %s248_s14 = int_to_ptr.vmem [resolvable:$true] %s2306_s14 }
  0x1b   : > { %s2679_s2 = sld [smem:[#allocation22_spill]] }
  0x1c   : > { %p2316_p13 = pneg %p2300_p11 }
  0x21   : > { %s1942_s17 = scalar_lea.hbm %s2679_s2, 512 }
  0x22   : > { %p1943_p12 = scmp.ne.s32.totalorder %s2679_s2, %s1942_s17  ;;  %p1949_p5 = scmp.lt.u32.totalorder %s1942_s17, %s2679_s2 }
  0x24   : > { %p1945_p0 = pnand %p2316_p13, %p1943_p12 }
  0x26   : > { %p1946_p3 = pneg %p1945_p0 }
  0x28   : > { %p1951_p7 = pnand %p1949_p5, %p1946_p3 }
  0x2a   : > { %1954 = shalt.err (!%p1951_p7)
}
  0x2b   : > { %s1955_s11 = scalar_lea.vmem %s2293_s9, 512  ;;  %p1963_p2 = scmp.lt.s32.totalorder %s2293_s9, %s2293_s9 }
  0x2c   : > { %p1956_p9 = scmp.ne.s32.totalorder %s2293_s9, %s1955_s11  ;;  %p1964_p6 = scmp.lt.s32.totalorder %s1955_s11, %s1955_s11 }
  0x2e   : > { %p1958_p10 = pnand %p1956_p9, %p2316_p13  ;;  %p1965_p12 = por %p1964_p6, %p1963_p2 }
  0x30   : > { %p1959_p1 = pneg %p1958_p10 }
  0x32   : > { %p1966_p0 = pnand %p1965_p12, %p1959_p1 }
  0x34   : > { %1969 = shalt.err (!%p1966_p0)
}
  0x35   : > { %s2666_s13 = smov 128   ;;  %s2667_s15 = smov 8  }
  0x36   : > { %1817 = dma.hbm_to_vmem [thread:$0]  (!%p2300_p11), %s2679_s2, 512, %s2293_s9, [#allocation8], %s2666_s13, %s2666_s13, %s2667_s15  }
  0x37   : > { %s2681_s3 = sld [smem:[#allocation23_spill]] }
  0x3d   : > { %s1970_s28 = scalar_lea.hbm %s2681_s3, 384 }
  0x3e   : > { %p1971_p1 = scmp.ne.s32.totalorder %s2681_s3, %s1970_s28  ;;  %p1977_p10 = scmp.lt.u32.totalorder %s1970_s28, %s2681_s3 }
  0x40   : > { %p1973_p2 = pnand %p1971_p1, %p2316_p13 }
  0x42   : > { %p1974_p6 = pneg %p1973_p2 }
  0x44   : > { %p1979_p3 = pnand %p1977_p10, %p1974_p6 }
  0x46   : > { %1982 = shalt.err (!%p1979_p3)
}
  0x47   : > { %s1983_s9 = scalar_lea.vmem %s2304_s12, 384  ;;  %p1991_p12 = scmp.lt.s32.totalorder %s2304_s12, %s2304_s12 }
  0x48   : > { %p1984_p5 = scmp.ne.s32.totalorder %s2304_s12, %s1983_s9  ;;  %p1992_p0 = scmp.lt.s32.totalorder %s1983_s9, %s1983_s9 }
  0x4a   : > { %p1986_p7 = pnand %p1984_p5, %p2316_p13  ;;  %p1993_p1 = por %p1992_p0, %p1991_p12 }
  0x4c   : > { %p1987_p9 = pneg %p1986_p7 }
  0x4e   : > { %p1994_p2 = pnand %p1993_p1, %p1987_p9 }
  0x50   : > { %1997 = shalt.err (!%p1994_p2)
}
  0x51   : > { %1820 = dma.hbm_to_vmem [thread:$0]  (!%p2300_p11), %s2681_s3, 384, %s2304_s12, [#allocation11], %s2666_s13, %s2666_s13, %s2667_s15  }
  0x52   : > { %s2682_s4 = sld [smem:[#allocation24_spill]] }
  0x58   : > { %s1998_s18 = scalar_lea.hbm %s2682_s4, 512 }
  0x59   : > { %p1999_p6 = scmp.ne.s32.totalorder %s2682_s4, %s1998_s18  ;;  %p2005_p5 = scmp.lt.u32.totalorder %s1998_s18, %s2682_s4 }
  0x5b   : > { %p2001_p10 = pnand %p1999_p6, %p2316_p13 }
  0x5d   : > { %p2002_p3 = pneg %p2001_p10 }
  0x5f   : > { %p2007_p7 = pnand %p2005_p5, %p2002_p3 }
  0x61   : > { %2010 = shalt.err (!%p2007_p7)
}
  0x62   : > { %s2011_s9 = scalar_lea.vmem %s248_s14, 512  ;;  %p2019_p1 = scmp.lt.s32.totalorder %s248_s14, %s248_s14 }
  0x63   : > { %p2012_p9 = scmp.ne.s32.totalorder %s248_s14, %s2011_s9  ;;  %p2020_p2 = scmp.lt.s32.totalorder %s2011_s9, %s2011_s9 }
  0x65   : > { %p2014_p12 = pnand %p2012_p9, %p2316_p13  ;;  %p2021_p4 = por %p2020_p2, %p2019_p1 }
  0x67   : > { %p2015_p0 = pneg %p2014_p12 }
  0x69   : > { %p2022_p8 = pnand %p2021_p4, %p2015_p0 }
  0x6b   : > { %2025 = shalt.err (!%p2022_p8)
}
  0x6c   : > { %1823 = dma.hbm_to_vmem [thread:$0]  (!%p2300_p11), %s2682_s4, 512, %s248_s14, [#allocation11], %s2666_s13, %s2666_s13, %s2667_s15  }
  0x6d   : > { %s47_s20 = sadd.s32 1, %s2168_s23  ;;  %s38_s10 = sadd.s32 1, %s2176_s25 }
  0x6e   : > { %p54_p4 = scmp.ne.s32.totalorder %s2168_s23, %s2164_s22  ;;  %p40_p8 = scmp.ge.s32.totalorder %s38_s10, 2 }
  0x6f   : > { %p55_p13 = scmp.eq.s32.totalorder %s2180_s26, 0  ;;  %p2683_p6 = scmp.eq.s32.totalorder %s2270_s27, 1 }
  0x70   : > { %p1838_p3 = scmp.lt.s32.totalorder %s2180_s26, 2  ;;  %s2707_s10 = smov (%p40_p8, %s38_s10), 0 }
  0x71   : > { %p2395_p10 = por %p2683_p6, %p54_p4  ;;  %p56_p5 = por %p55_p13, %p54_p4 }
  0x72   : > { %s2403_s16 = sand.u32 1, %s2168_s23   ;;  %s42_s14 = ssub.s32 %s2176_s25, %s2707_s10 }
  0x73   : > { %s2684_s30 = scalar_select %p2395_p10, 1, 0 }
  0x74   : > { %p45_p11 = scmp.eq.s32.totalorder %s42_s14, 0  ;;  %s1619_s17 = sshll.u32 %s2403_s16, 4 }
  0x75   : > { %s1664_s18 = sshll.u32 %s2176_s25, 8  ;;  %s2685_s0 = sld [smem:[#allocation21_spill]] }
  0x76   : > { %s2410_s19 = scalar_select %p45_p11, %s2168_s23, %s47_s20  }
  0x77   : > { %s268_s9 = scalar_lea.vmem [#allocation4], %s1619_s17  ;;  %p2421_p7 = pnand %p1838_p3, %p56_p5 }
  0x78   : > { %s277_s12 = sshll.u32 %s268_s9, 4  ;;  %s1622_s14 = sshll.u32 %s2403_s16, 3  ;;  %s2417_s12 = int_to_ptr.vmem [resolvable:$true] %s277_s12 }
  0x79   : > { %s265_s28 = scalar_lea.sflag [#allocation5], %s2403_s16  ;;  %p2028_p12 = pneg %p2421_p7 }
  0x7b   : > { %s2415_s11 = scalar_lea.hbm %s2685_s0, %s1664_s18  ;;  %s2031_s9 = scalar_lea.hbm %s2685_s0, 512 }
  0x7c   : > { %s2026_s18 = scalar_lea.hbm %s2415_s11, 256  ;;  %p2032_p2 = scmp.lt.u32.totalorder %s2415_s11, %s2685_s0 }
  0x7d   : > { %p2027_p9 = scmp.ne.s32.totalorder %s2415_s11, %s2026_s18  ;;  %p2033_p4 = scmp.lt.u32.totalorder %s2031_s9, %s2026_s18 }
  0x7e   : > { %p2035_p13 = scmp.lt.u32.totalorder %s2026_s18, %s2415_s11 }
  0x7f   : > { %p2029_p0 = pnand %p2028_p12, %p2027_p9  ;;  %p2034_p8 = por %p2033_p4, %p2032_p2 }
  0x81   : > { %p2030_p1 = pneg %p2029_p0  ;;  %p2036_p6 = por %p2035_p13, %p2034_p8 }
  0x83   : > { %p2037_p3 = pnand %p2036_p6, %p2030_p1 }
  0x85   : > { %2040 = shalt.err (!%p2037_p3)
}
  0x86   : > { %s2041_s20 = scalar_lea.vmem %s2417_s12, 256  ;;  %s2187_s17 = smov [#allocation4]  }
  0x87   : > { %p2042_p5 = scmp.ne.s32.totalorder %s2417_s12, %s2041_s20  ;;  %s2046_s8 = sshll.u32 %s2187_s17, 4  ;;  %s2047_s8 = int_to_ptr.vmem [resolvable:$false] %s2046_s8 }
  0x88   : > { %s2048_s13 = scalar_lea.vmem %s2047_s8, 512  ;;  %p2049_p0 = scmp.lt.s32.totalorder %s2417_s12, %s2047_s8 }
  0x89   : > { %p2044_p11 = pnand %p2042_p5, %p2028_p12  ;;  %p2050_p2 = scmp.lt.s32.totalorder %s2048_s13, %s2041_s20 }
  0x8b   : > { %p2045_p9 = pneg %p2044_p11  ;;  %p2051_p4 = por %p2050_p2, %p2049_p0 }
  0x8d   : > { %p2052_p8 = pnand %p2051_p4, %p2045_p9 }
  0x8f   : > { %2055 = shalt.err (!%p2052_p8)
}
  0x90   : > { %s2687_s15 = smov 8   ;;  %s2688_s18 = smov 128  }
  0x91   : > { %1827 = dma.hbm_to_vmem [thread:$0]  (!%p2421_p7), %s2415_s11, 256, %s2417_s12, %s265_s28, %s2688_s18, %s2688_s18, %s2687_s15  }
  0x92   : > { %s1623_s9 = sshll.u32 %s2176_s25, 7  ;;  %s291_s13 = scalar_lea.vmem [#allocation7], %s1622_s14 }
  0x93   : > { %s2462_s8 = scalar_lea.hbm %s2655_s1, %s1623_s9  ;;  %s298_s0 = sshll.u32 %s291_s13, 4  ;;  %s299_s0 = int_to_ptr.vmem [resolvable:$true] %s298_s0 }
  0x94   : > { %s2689_s2 = sand.u32 1, %s2180_s26   ;;  %s2056_s4 = scalar_lea.hbm %s2462_s8, 128 }
  0x95   : > { %s288_s3 = scalar_lea.sflag [#allocation8], %s2689_s2  ;;  %p2057_p1 = scmp.ne.s32.totalorder %s2462_s8, %s2056_s4 }
  0x96   : > { %s2061_s28 = scalar_lea.hbm %s2655_s1, 256  ;;  %p2062_p3 = scmp.lt.u32.totalorder %s2462_s8, %s2655_s1 }
  0x97   : > { %p2059_p13 = pnand %p2057_p1, %p2028_p12  ;;  %p2063_p5 = scmp.lt.u32.totalorder %s2061_s28, %s2056_s4 }
  0x98   : > { %p2065_p9 = scmp.lt.u32.totalorder %s2056_s4, %s2462_s8 }
  0x99   : > { %p2060_p6 = pneg %p2059_p13  ;;  %p2064_p11 = por %p2063_p5, %p2062_p3 }
  0x9b   : > { %p2066_p0 = por %p2065_p9, %p2064_p11 }
  0x9d   : > { %p2067_p2 = pnand %p2066_p0, %p2060_p6 }
  0x9f   : > { %2070 = shalt.err (!%p2067_p2)
}
  0xa0   : > { %s2071_s2 = scalar_lea.vmem %s299_s0, 128  ;;  %s2188_s14 = smov [#allocation7]  }
  0xa1   : > { %p2072_p4 = scmp.ne.s32.totalorder %s299_s0, %s2071_s2  ;;  %s2076_s18 = sshll.u32 %s2188_s14, 4  ;;  %s2077_s18 = int_to_ptr.vmem [resolvable:$false] %s2076_s18 }
  0xa2   : > { %s2078_s9 = scalar_lea.vmem %s2077_s18, 256  ;;  %p2079_p13 = scmp.lt.s32.totalorder %s299_s0, %s2077_s18 }
  0xa3   : > { %p2074_p8 = pnand %p2072_p4, %p2028_p12  ;;  %p2080_p10 = scmp.lt.s32.totalorder %s2078_s9, %s2071_s2 }
  0xa5   : > { %p2075_p1 = pneg %p2074_p8  ;;  %p2081_p3 = por %p2080_p10, %p2079_p13 }
  0xa7   : > { %p2082_p5 = pnand %p2081_p3, %p2075_p1 }
  0xa9   : > { %2085 = shalt.err (!%p2082_p5)
}
  0xaa   : > { %1830 = dma.hbm_to_vmem [thread:$0]  (!%p2421_p7), %s2462_s8, 128, %s299_s0, %s288_s3  }
  0xab   : > { %p2690_p6 = scmp.ne.s32.totalorder %s2677_s7, 0 }
  0xac   : > { %s2490_s4 = sand.u32 (!%p2690_p6), 1, %s2164_s22   ;;  %p2691_p10 = scmp.ne.s32.totalorder (!%p2690_p6), %s2674_s29, 0 }
  0xad   : > { %307 = sbr.rel (%p2690_p6) target bundleno = 1645 (0x66d), region = 44  ;;  %s1625_s17 = sshll.u32 (!%p2690_p6), %s2490_s4, 4 }
  0xae   : > { %s310_s20 = scalar_lea.sflag (!%p2690_p6), [#allocation5], %s2490_s4  ;;  %s2496_s13 = scalar_lea.vmem (!%p2690_p6), [#allocation4], %s1625_s17 }
  0xb4   : > { %2139 = dma.done.wait (%p2691_p10), %s310_s20, 256  }
  0xb5   : > { %2141 = vsyncadd (%p2691_p10), %s310_s20, 4294967040  ;;  %s318_s0 = sand.u32 1, %s2270_s27   ;;  %s1626_s3 = sshll.u32 %s2490_s4, 3 }
  0xb6   : > { %s319_s7 = scalar_lea.sflag [#allocation8], %s318_s0  ;;  %s322_s21 = scalar_lea.vmem [#allocation7], %s1626_s3 }
  0xb7   : > { %2143 = dma.done.wait (%p2691_p10), %s319_s7, 128  }
  0xb8   : > { %2145 = vsyncadd (%p2691_p10), %s319_s7, 4294967168  ;;  %p2692_p7 = scmp.eq.s32.totalorder %s2270_s27, 0 }
  0xba   : > { %2147 = dma.done.wait (%p2692_p7), [#allocation8], 512   ;;  %p2693_p12 = pmov %p2692_p7 }
  0xbb   : > { %p2694_p11 = pmov %p2692_p7 }
  0xbc   : > { %2149 = vsyncadd (%p2693_p12), [#allocation8], 4294966784 }
  0xbd   : > { %2151 = dma.done.wait (%p2694_p11), [#allocation11], 896   ;;  %p2695_p9 = pmov %p2692_p7 }
  0xbe   : > { %v2189_v0 = vmov 0.0|0.0   ;;  %vm2190_vm0 = vmmov 0   ;;  %v2191_v1 = vmov 0.0   ;;  %v376_v2 = vld [vmem:[#allocation10] sm:$0xff]  ;;  %v377_v3 = vld [vmem:[#allocation10 + $0x8] sm:$0xff]  ;;  %vm470_vm1 = vcmask 261120  }
  0xbf   : > { %2153 = vsyncadd (%p2695_p9), [#allocation11], 4294966400  ;;  %1777 = vmatprep.subr.bf16.mxu0 %v2189_v0  ;;  %1712 = vmatprep.mubr.msk.f32.mxu0 %vm2190_vm0, %v2191_v1  ;;  %v462_v4 = vld [vmem:[#allocation9] sm:$0xff]  ;;  %v1778_v5 = vpack.c.bf16 %v377_v3, %v376_v2  ;;  %v463_v6 = vld [vmem:[#allocation9 + $0x8] sm:$0xff]  ;;  %vm383_vm2 = vcmask 195584   ;;  %vm457_vm3 = vcmask 523264  }
  0xc0   : > { %v464_v7 = vld [vmem:[#allocation9 + $0x10] sm:$0xff]  ;;  %v1780_v8 = vpack.c.bf16 %v463_v6, %v462_v4  ;;  %v465_v9 = vld [vmem:[#allocation9 + $0x18] sm:$0xff]  ;;  %vm555_vm4 = vcmask 64512   ;;  %s2192_s12 = smov 120   ;;  %s2193_s28 = smov 112   ;;  %vm949_vm5 = vcmask 130112  }
  0xc1   : > { %v459_v10 = vld [vmem:[%s2496_s13] sm:$0xff]  ;;  %1779 = vmatpush3.bf16.msra.mxu0 %v1778_v5  ;;  %v1784_v11 = vpack.c.bf16 %v465_v9, %v464_v7  ;;  %v460_v14 = vld [vmem:[%s2496_s13 + $0x8] sm:$0xff]  ;;  %s2194_s16 = smov 104   ;;  %s2195_s15 = smov 88   ;;  %vm1153_vm6 = vcmask 195712   ;;  %vm1357_vm7 = vcmask 261312  }
  0xc2   : > { %1723 = vmatprep.mubr.msk.f32.mxu1 %vm470_vm1, %v459_v10  ;;  %1781 = vmatprep.subr.bf16.mxu1 %v1780_v8  ;;  %v378_v12 = vld [vmem:[#allocation10 + $0x10] sm:$0xff]  ;;  %v1631_v15 = vld [vmem:[%s2659_s5 + $0x1] ss:$0 sm:$0xff]  ;;  %v2526_v19 = vld [vmem:[%s2659_s5] ss:$0 sm:$0xff]  ;;  %s2196_s2 = smov 96  }
  0xc3   : > { %1710 = vmatprep.subr.mxu0 %v2191_v1  ;;  %1783 = vmatpush3.bf16.msra.mxu1 %v1780_v8  ;;  %v374_v13 = vld [vmem:[%s322_s21] sm:$0xff]  ;;  %s2197_s14 = smov 80   ;;  %s2198_s18 = smov 72  }
  0xc4   : > { %1785 = vmatprep.subr.bf16.mxu1 %v1784_v11  ;;  %s2199_s9 = smov 8   ;;  %s2200_s20 = smov 16  }
  0xc5   : > { %1711 = vmatpush3.msra.mxu0 %v378_v12  ;;  %s2201_s13 = smov 24   ;;  %s367_s0 = scalar_lea.vmem [#allocation13], %s1625_s17 }
  0xc6   : > { %1713 = vmatmul.mubr.msk.f32.vlgmr.msra.gmra.mrb[0].mxu0 %vm383_vm2, %v374_v13  ;;  %s1474_s3 = sshll.u32 %s367_s0, 4  ;;  %s1665_s7 = sshll.u32 %s2172_s24, 8  ;;  %s2597_s3 = int_to_ptr.vmem [resolvable:$true] %s1474_s3 }
  0xc7   : > { %1787 = vmatpush3.bf16.msra.mxu1 %v1784_v11  ;;  %s2602_s29 = scalar_lea.hbm %s2660_s6, %s1665_s7  ;;  %s1459_s17 = scalar_lea.sflag [#allocation6], %s2490_s4 }
  0xc8   : > { %s2086_s24 = scalar_lea.vmem %s2597_s3, 256  ;;  %p2696_p2 = scmp.ne.s32.totalorder %s2684_s30, 0 }
  0xc9   : > { %p2087_p0 = scmp.ne.s32.totalorder %s2597_s3, %s2086_s24  ;;  %s2202_s8 = smov [#allocation13]  }
  0xca   : > { %1724 = vmatmul.mubr.msk.f32.vlgmr.msra.gmra.mrb[0].mxu1 %vm470_vm1, %v460_v14  ;;  %s2090_s11 = sshll.u32 %s2202_s8, 4  ;;  %s2091_s11 = int_to_ptr.vmem [resolvable:$false] %s2090_s11 }
  0xcb   : > { %p2088_p4 = pnand %p2087_p0, %p2696_p2  ;;  %p2093_p1 = scmp.lt.s32.totalorder %s2597_s3, %s2091_s11 }
  0xcd   : > { %p2089_p8 = pneg %p2088_p4 }
 0x199   : > { %v453_v16 = vpop.f32.mrb[0].mxu0 }
 0x19a   : > { %v454_v17 = vadd.f32 %v1631_v15, %v453_v16  ;;  %v1714_v18 = vpop.f32.mrb[1].mxu0 }
 0x19c   : > { %458 = vst.msk [vmem:[#allocation2] sm:$0xff] %vm457_vm3, %v454_v17 }
 0x19d   : > { %v1725_v20 = vpop.f32.mrb[0].mxu1 }
 0x19e   : > { %v549_v21 = vadd.f32 %v1725_v20, %v2526_v19  ;;  %v543_v22 = vpop.f32.mrb[1].mxu1 }
 0x19f   : > { %v544_v23 = vadd.f32 %v2526_v19, %v543_v22 }
 0x1a0   : > { %v553_v24 = vmul.f32 0.35355338, %v549_v21 }
 0x1a1   : > { %v552_v25 = vmul.f32 0.35355338, %v544_v23 }
 0x1a2   : > { %750 = vrot.lane.b32.xlu1 %v553_v24, %s2192_s12 }
 0x1a3   : > { %748 = vrot.lane.b32.xlu0 %v552_v25, %s2192_s12  ;;  %1728 = vmatprep.mubr.msk.f32.mxu1 %vm555_vm4, %v552_v25  ;;  %v2531_v26 = vld [vmem:[#allocation2] sm:$0xff] }
 0x1a4   : > { %1726 = vmatprep.subr.msk.mxu1 %vm555_vm4, %v2531_v26 }
 0x1a5   : > { %1727 = vmatpush3.xpose.msk.msra.mxu1 %vm555_vm4, %v2531_v26 }
 0x1a6   : > { %956 = vrot.lane.b32.xlu1 %v2531_v26, %s2193_s28 }
 0x1a7   : > { %752 = vrot.lane.b32.xlu0 %v2531_v26, %s2192_s12  ;;  %s2092_s12 = scalar_lea.vmem %s2091_s11, 512 }
 0x1a8   : > { %1729 = vmatmul.mubr.msk.f32.vlgmr.msra.gmra.mrb[2].mxu1 %vm555_vm4, %v553_v24  ;;  %p2094_p13 = scmp.lt.s32.totalorder %s2092_s12, %s2086_s24 }
 0x1aa   : > { %954 = vrot.lane.b32.xlu1 %v553_v24, %s2193_s28  ;;  %p2095_p3 = por %p2094_p13, %p2093_p1 }
 0x1ab   : > { %952 = vrot.lane.b32.xlu0 %v552_v25, %s2193_s28 }
 0x1ac   : > { %p2096_p5 = pnand %p2095_p3, %p2089_p8 }
 0x1ae   : > { %1156 = vrot.lane.b32.xlu1 %v552_v25, %s2194_s16 }
 0x1af   : > { %1160 = vrot.lane.b32.xlu0 %v2531_v26, %s2194_s16 }
 0x1b3   : > { %1158 = vrot.lane.b32.xlu0 %v553_v24, %s2194_s16 }
 0x214   : > { %v751_v27 = vpop.permute.xlu1 %750 }
 0x215   : > { %v749_v28 = vpop.permute.xlu0 %748 }
 0x216   : > { %1738 = vmatprep.mubr.msk.f32.mxu0 %vm555_vm4, %v749_v28 }
 0x218   : > { %v957_v29 = vpop.permute.xlu1 %956 }
 0x219   : > { %v753_v30 = vpop.permute.xlu0 %752 }
 0x21a   : > { %1736 = vmatprep.subr.msk.mxu0 %vm555_vm4, %v753_v30 }
 0x21b   : > { %1737 = vmatpush3.xpose.msk.msra.mxu0 %vm555_vm4, %v753_v30 }
 0x21c   : > { %v955_v31 = vpop.permute.xlu1 %954  ;;  %1746 = vmatprep.subr.msk.mxu0 %vm555_vm4, %v957_v29 }
 0x21d   : > { %v953_v32 = vpop.permute.xlu0 %952 }
 0x21e   : > { %1739 = vmatmul.mubr.msk.f32.vlgmr.msra.gmra.mrb[2].mxu0 %vm555_vm4, %v751_v27 }
 0x21f   : > { %1747 = vmatpush3.xpose.msk.msra.mxu0 %vm555_vm4, %v957_v29  ;;  %1748 = vmatprep.mubr.msk.f32.mxu0 %vm555_vm4, %v953_v32 }
 0x220   : > { %v1157_v34 = vpop.permute.xlu1 %1156 }
 0x221   : > { %v1161_v33 = vpop.permute.xlu0 %1160 }
 0x222   : > { %1749 = vmatmul.mubr.msk.f32.vlgmr.msra.gmra.mrb[4].mxu0 %vm555_vm4, %v955_v31  ;;  %1756 = vmatprep.subr.msk.mxu0 %vm555_vm4, %v1161_v33 }
 0x223   : > { %1757 = vmatpush3.xpose.msk.msra.mxu0 %vm555_vm4, %v1161_v33  ;;  %1758 = vmatprep.mubr.msk.f32.mxu0 %vm555_vm4, %v1157_v34 }
 0x225   : > { %v1159_v35 = vpop.permute.xlu0 %1158 }
 0x226   : > { %1759 = vmatmul.mubr.msk.f32.vlgmr.msra.gmra.mrb[6].mxu0 %vm555_vm4, %v1159_v35 }
 0x27b   : > { %v1730_v36 = vpop.f32.mrb[2].mxu1 }
 0x27c   : > { %v631_v37 = vpop.f32.mrb[3].mxu1  ;;  %v643_v38 = vsel %vm555_vm4, %v1730_v36, -inf }
 0x27d   : > { %644 = vmax.xlane.f32.xlu0 %v643_v38  ;;  %v640_v39 = vsel %vm555_vm4, %v631_v37, -inf }
 0x27e   : > { %641 = vmax.xlane.f32.xlu1 %v640_v39 }
 0x2f1   : > { %v1740_v40 = vpop.f32.mrb[2].mxu0 }
 0x2f2   : > { %v826_v41 = vpop.f32.mrb[3].mxu0  ;;  %v838_v42 = vsel %vm555_vm4, %v1740_v40, -inf }
 0x2f3   : > { %839 = vmax.xlane.f32.xlu1 %v838_v42  ;;  %v835_v43 = vsel %vm555_vm4, %v826_v41, -inf }
 0x2f4   : > { %836 = vmax.xlane.f32.xlu0 %v835_v43 }
 0x2f5   : > { %v1750_v44 = vpop.f32.mrb[4].mxu0 }
 0x2f6   : > { %v1030_v45 = vpop.f32.mrb[5].mxu0  ;;  %v1042_v46 = vsel %vm555_vm4, %v1750_v44, -inf }
 0x2f7   : > { %1043 = vmax.xlane.f32.xlu1 %v1042_v46  ;;  %v1039_v47 = vsel %vm555_vm4, %v1030_v45, -inf }
 0x2f8   : > { %1040 = vmax.xlane.f32.xlu0 %v1039_v47 }
 0x2f9   : > { %v1760_v48 = vpop.f32.mrb[6].mxu0 }
 0x2fa   : > { %v1234_v49 = vpop.f32.mrb[7].mxu0  ;;  %v1246_v50 = vsel %vm555_vm4, %v1760_v48, -inf }
 0x2fb   : > { %1247 = vmax.xlane.f32.xlu1 %v1246_v50  ;;  %v1243_v51 = vsel %vm555_vm4, %v1234_v49, -inf }
 0x2fc   : > { %1244 = vmax.xlane.f32.xlu0 %v1243_v51 }
 0x30a   : > { %v645_v52 = vpop.xlane.xlu0 %644 }
 0x30b   : > { %v642_v53 = vpop.xlane.xlu1 %641  ;;  %v647_v54 = vsub.f32 %v1730_v36, %v645_v52 }
 0x30c   : > { %857 = vrot.lane.b32.xlu1 %v2531_v26, %s2195_s15  ;;  %v646_v55 = vsub.f32 %v631_v37, %v642_v53 }
 0x30d   : > { %v650_v56 = vmul.f32 1.442695, %v647_v54 }
 0x30e   : > { %v648_v57 = vmul.f32 1.442695, %v646_v55 }
 0x30f   : > { %1910 = vpow2.f32 %v650_v56 }
 0x310   : > { %1912 = vpow2.f32 %v648_v57 }
 0x312   : > { %662 = vrot.lane.b32.xlu0 %v2531_v26, %s2196_s2 }
 0x319   : > { %v2564_v58 = vpop.eup %1910 }
 0x31a   : > { %v1913_v59 = vpop.eup %1912  ;;  %v655_v60 = vsel %vm555_vm4, %v2564_v58, 0.0 }
 0x31b   : > { %v652_v61 = vsel %vm555_vm4, %v1913_v59, 0.0 }
 0x330   : > { %656 = vadd.xlane.f32.xlu1 %v655_v60  ;;  %v1364_v60 = vld [vmem:[#allocation12 + $0x8] sm:$0xff] }
 0x331   : > { %653 = vadd.xlane.f32.xlu0 %v652_v61 }
 0x380   : > { %v840_v62 = vpop.xlane.xlu1 %839 }
 0x381   : > { %v842_v63 = vsub.f32 %v1740_v40, %v840_v62  ;;  %v837_v0 = vpop.xlane.xlu0 %836  ;;  %v1365_v62 = vld [vmem:[#allocation12 + $0x10] sm:$0xff] }
 0x382   : > { %v841_v1 = vsub.f32 %v826_v41, %v837_v0 }
 0x383   : > { %v845_v2 = vmul.f32 1.442695, %v842_v63  ;;  %v1366_v63 = vld [vmem:[#allocation12 + $0x18] sm:$0xff] }
 0x384   : > { %v843_v3 = vmul.f32 1.442695, %v841_v1  ;;  %v1044_v4 = vpop.xlane.xlu1 %1043  ;;  %v1792_v0 = vpack.c.bf16 %v1366_v63, %v1365_v62 }
 0x385   : > { %1914 = vpow2.f32 %v845_v2  ;;  %v1046_v5 = vsub.f32 %v1750_v44, %v1044_v4  ;;  %v1041_v6 = vpop.xlane.xlu0 %1040 }
 0x386   : > { %1916 = vpow2.f32 %v843_v3  ;;  %v1045_v7 = vsub.f32 %v1030_v45, %v1041_v6 }
 0x387   : > { %v1049_v8 = vmul.f32 1.442695, %v1046_v5 }
 0x388   : > { %v1047_v9 = vmul.f32 1.442695, %v1045_v7  ;;  %v1248_v10 = vpop.xlane.xlu1 %1247 }
 0x389   : > { %1918 = vpow2.f32 %v1049_v8  ;;  %v1250_v11 = vsub.f32 %v1760_v48, %v1248_v10  ;;  %v1245_v12 = vpop.xlane.xlu0 %1244 }
 0x38a   : > { %1920 = vpow2.f32 %v1047_v9  ;;  %v1249_v13 = vsub.f32 %v1234_v49, %v1245_v12 }
 0x38b   : > { %v1253_v14 = vmul.f32 1.442695, %v1250_v11 }
 0x38c   : > { %v1251_v15 = vmul.f32 1.442695, %v1249_v13  ;;  %v858_v18 = vpop.permute.xlu1 %857 }
 0x38d   : > { %1922 = vpow2.f32 %v1253_v14  ;;  %v663_v16 = vpop.permute.xlu0 %662 }
 0x38e   : > { %1924 = vpow2.f32 %v1251_v15  ;;  %1731 = vmatprep.subr.mxu1 %v663_v16 }
 0x38f   : > { %v1915_v17 = vpop.eup %1914  ;;  %1732 = vmatpush3.msra.mxu1 %v663_v16 }
 0x390   : > { %v1917_v20 = vpop.eup %1916  ;;  %1741 = vmatprep.subr.mxu1 %v858_v18  ;;  %v850_v21 = vsel %vm555_vm4, %v1915_v17, 0.0 }
 0x391   : > { %851 = vadd.xlane.f32.xlu1 %v850_v21  ;;  %v847_v22 = vsel %vm555_vm4, %v1917_v20, 0.0 }
 0x392   : > { %848 = vadd.xlane.f32.xlu0 %v847_v22 }
 0x393   : > { %v1919_v23 = vpop.eup %1918 }
 0x394   : > { %v1921_v24 = vpop.eup %1920  ;;  %v1054_v25 = vsel %vm555_vm4, %v1919_v23, 0.0 }
 0x395   : > { %1055 = vadd.xlane.f32.xlu1 %v1054_v25  ;;  %v1051_v27 = vsel %vm555_vm4, %v1921_v24, 0.0 }
 0x396   : > { %1052 = vadd.xlane.f32.xlu0 %v1051_v27 }
 0x397   : > { %v1923_v28 = vpop.eup %1922 }
 0x398   : > { %v1925_v29 = vpop.eup %1924  ;;  %v1258_v30 = vsel %vm555_vm4, %v1923_v28, 0.0 }
 0x399   : > { %1259 = vadd.xlane.f32.xlu1 %v1258_v30  ;;  %v1255_v31 = vsel %vm555_vm4, %v1925_v29, 0.0 }
 0x39a   : > { %1256 = vadd.xlane.f32.xlu0 %v1255_v31 }
 0x3aa   : > { %1061 = vrot.lane.b32.xlu1 %v2531_v26, %s2197_s14 }
 0x3b0   : > { %1265 = vrot.lane.b32.xlu0 %v2531_v26, %s2198_s18 }
 0x3bd   : > { %v657_v32 = vpop.xlane.xlu1 %656 }
 0x3be   : > { %1926 = vrcp.f32 %v657_v32  ;;  %v654_v33 = vpop.xlane.xlu0 %653 }
 0x3bf   : > { %1928 = vrcp.f32 %v654_v33 }
 0x3c8   : > { %v1927_v34 = vpop.eup %1926 }
 0x3c9   : > { %v1929_v35 = vpop.eup %1928  ;;  %v661_v37 = vmul.f32 %v1927_v34, %v2564_v58 }
 0x3ca   : > { %v660_v36 = vmul.f32 %v1929_v35, %v1913_v59  ;;  %v1363_v59 = vld [vmem:[#allocation12] sm:$0xff] }
 0x3cb   : > { %v1788_v61 = vpack.c.bf16 %v1364_v60, %v1363_v59 }
 0x3cc   : > { %1733 = vmatprep.mubr.msk.f32.mxu1 %vm555_vm4, %v660_v36 }
 0x3cd   : > { %1734 = vmatmul.mubr.msk.f32.vlgmr.msra.gmra.mrb[4].mxu1 %vm555_vm4, %v661_v37  ;;  %1789 = vmatprep.subr.bf16.mxu0 %v1788_v61 }
 0x3ce   : > { %1742 = vmatpush3.msra.mxu1 %v858_v18  ;;  %1791 = vmatpush3.bf16.msra.mxu0 %v1788_v61 }
 0x3cf   : > { %1793 = vmatprep.subr.bf16.mxu0 %v1792_v0 }
 0x3d2   : > { %1795 = vmatpush3.bf16.msra.mxu0 %v1792_v0 }
 0x41e   : > { %v852_v38 = vpop.xlane.xlu1 %851 }
 0x41f   : > { %1930 = vrcp.f32 %v852_v38  ;;  %v849_v39 = vpop.xlane.xlu0 %848 }
 0x420   : > { %1932 = vrcp.f32 %v849_v39 }
 0x422   : > { %v1056_v40 = vpop.xlane.xlu1 %1055 }
 0x423   : > { %1934 = vrcp.f32 %v1056_v40  ;;  %v1053_v26 = vpop.xlane.xlu0 %1052 }
 0x424   : > { %1936 = vrcp.f32 %v1053_v26 }
 0x426   : > { %v1260_v41 = vpop.xlane.xlu1 %1259 }
 0x427   : > { %1938 = vrcp.f32 %v1260_v41  ;;  %v1257_v42 = vpop.xlane.xlu0 %1256 }
 0x428   : > { %1940 = vrcp.f32 %v1257_v42 }
 0x429   : > { %v1931_v43 = vpop.eup %1930 }
 0x42a   : > { %v1933_v44 = vpop.eup %1932  ;;  %v1062_v45 = vpop.permute.xlu1 %1061  ;;  %v856_v47 = vmul.f32 %v1931_v43, %v1915_v17 }
 0x42b   : > { %1751 = vmatprep.subr.mxu1 %v1062_v45  ;;  %v855_v46 = vmul.f32 %v1933_v44, %v1917_v20  ;;  %v1266_v50 = vpop.permute.xlu0 %1265 }
 0x42d   : > { %v1935_v48 = vpop.eup %1934  ;;  %1743 = vmatprep.mubr.msk.f32.mxu1 %vm555_vm4, %v855_v46 }
 0x42e   : > { %v1937_v49 = vpop.eup %1936  ;;  %1744 = vmatmul.mubr.msk.f32.vlgmr.msra.gmra.mrb[6].mxu1 %vm555_vm4, %v856_v47  ;;  %v1060_v52 = vmul.f32 %v1935_v48, %v1919_v23 }
 0x42f   : > { %1752 = vmatpush3.msra.mxu1 %v1062_v45  ;;  %v1059_v51 = vmul.f32 %v1937_v49, %v1921_v24 }
 0x430   : > { %1761 = vmatprep.subr.mxu1 %v1266_v50 }
 0x431   : > { %v1939_v53 = vpop.eup %1938  ;;  %1753 = vmatprep.mubr.msk.f32.mxu1 %vm555_vm4, %v1059_v51 }
 0x432   : > { %v1941_v54 = vpop.eup %1940  ;;  %1754 = vmatmul.mubr.msk.f32.vlgmr.msra.gmra.mrb[8].mxu1 %vm555_vm4, %v1060_v52  ;;  %v1264_v56 = vmul.f32 %v1939_v53, %v1923_v28 }
 0x433   : > { %1762 = vmatpush3.msra.mxu1 %v1266_v50  ;;  %v1263_v55 = vmul.f32 %v1941_v54, %v1925_v29 }
 0x435   : > { %1763 = vmatprep.mubr.msk.f32.mxu1 %vm555_vm4, %v1263_v55 }
 0x436   : > { %1764 = vmatmul.mubr.msk.f32.vlgmr.msra.gmra.mrb[10].mxu1 %vm555_vm4, %v1264_v56 }
 0x4a0   : > { %v1735_v57 = vpop.f32.mrb[4].mxu1 }
 0x4a1   : > { %747 = vst.msk [vmem:[#allocation3 + $0x8] sm:$0xff] %vm555_vm4, %v1735_v57  ;;  %v737_v58 = vpop.f32.mrb[5].mxu1 }
 0x4a2   : > { %746 = vst.msk [vmem:[#allocation3] sm:$0xff] %vm555_vm4, %v737_v58 }
 0x501   : > { %v1745_v1 = vpop.f32.mrb[6].mxu1 }
 0x502   : > { %945 = vrot.lane.b32.xlu0 %v1745_v1, %s2199_s9  ;;  %v932_v2 = vpop.f32.mrb[7].mxu1 }
 0x503   : > { %943 = vrot.lane.b32.xlu1 %v932_v2, %s2199_s9 }
 0x505   : > { %v1755_v3 = vpop.f32.mrb[8].mxu1 }
 0x506   : > { %1149 = vrot.lane.b32.xlu0 %v1755_v3, %s2200_s20  ;;  %v1136_v4 = vpop.f32.mrb[9].mxu1 }
 0x507   : > { %1147 = vrot.lane.b32.xlu1 %v1136_v4, %s2200_s20 }
 0x509   : > { %v1765_v5 = vpop.f32.mrb[10].mxu1 }
 0x50a   : > { %1353 = vrot.lane.b32.xlu0 %v1765_v5, %s2201_s13  ;;  %v1340_v6 = vpop.f32.mrb[11].mxu1 }
 0x50b   : > { %1351 = vrot.lane.b32.xlu1 %v1340_v6, %s2201_s13 }
 0x50f   : > { %1372 = vrot.lane.b32.xlu1 %v2526_v19, %s2196_s2 }
 0x574   : > { %v946_v7 = vpop.permute.xlu0 %945 }
 0x575   : > { %951 = vst.msk [vmem:[#allocation3 + $0x8] sm:$0xff] %vm949_vm5, %v946_v7  ;;  %v944_v8 = vpop.permute.xlu1 %943 }
 0x576   : > { %950 = vst.msk [vmem:[#allocation3] sm:$0xff] %vm949_vm5, %v944_v8 }
 0x578   : > { %v1150_v9 = vpop.permute.xlu0 %1149 }
 0x579   : > { %1155 = vst.msk [vmem:[#allocation3 + $0x8] sm:$0xff] %vm1153_vm6, %v1150_v9  ;;  %v1148_v10 = vpop.permute.xlu1 %1147 }
 0x57a   : > { %1154 = vst.msk [vmem:[#allocation3] sm:$0xff] %vm1153_vm6, %v1148_v10 }
 0x57c   : > { %v1354_v11 = vpop.permute.xlu0 %1353 }
 0x57d   : > { %1359 = vst.msk [vmem:[#allocation3 + $0x8] sm:$0xff] %vm1357_vm7, %v1354_v11  ;;  %v1352_v12 = vpop.permute.xlu1 %1351 }
 0x57e   : > { %1358 = vst.msk [vmem:[#allocation3] sm:$0xff] %vm1357_vm7, %v1352_v12 }
 0x581   : > { %v1373_v14 = vpop.permute.xlu1 %1372 }
 0x584   : > { %v1362_v19 = vld [vmem:[#allocation3 + $0x8] sm:$0xff] }
 0x585   : > { %v1361_v13 = vld [vmem:[#allocation3] sm:$0xff] }
 0x586   : > { %1774 = vmatprep.mubr.msk.f32.mxu0 %vm470_vm1, %v1361_v13 }
 0x587   : > { %1775 = vmatmul.mubr.msk.f32.vlgmr.msra.gmra.mrb[8].mxu0 %vm470_vm1, %v1362_v19 }
 0x65a   : > { %v1776_v15 = vpop.f32.mrb[8].mxu0 }
 0x65b   : > { %v1453_v16 = vadd.f32 %v1776_v15, %v1373_v14  ;;  %v1447_v17 = vpop.f32.mrb[9].mxu0 }
 0x65c   : > { %v1448_v18 = vadd.f32 %v1447_v17, %v1373_v14 }
 0x65d   : > { %1457 = vst.msk [vmem:[%s367_s0 + $0x8] sm:$0xff] %vm470_vm1, %v1453_v16 }
 0x65e   : > { %1456 = vst.msk [vmem:[%s367_s0] sm:$0xff] %vm470_vm1, %v1448_v18 }
 0x65f   : > { %2099 = shalt.err (!%p2096_p5)
}
 0x660   : > { %s2100_s28 = scalar_lea.hbm %s2602_s29, 256  ;;  %s2104_s2 = scalar_lea.hbm %s2660_s6, 512 }
 0x661   : > { %p2101_p6 = scmp.ne.s32.totalorder %s2602_s29, %s2100_s28  ;;  %p2105_p12 = scmp.lt.u32.totalorder %s2602_s29, %s2660_s6 }
 0x662   : > { %p2106_p11 = scmp.lt.u32.totalorder %s2104_s2, %s2100_s28  ;;  %p2108_p0 = scmp.lt.u32.totalorder %s2100_s28, %s2602_s29 }
 0x663   : > { %p2102_p10 = pnand %p2101_p6, %p2696_p2 }
 0x664   : > { %p2107_p9 = por %p2106_p11, %p2105_p12 }
 0x665   : > { %p2103_p7 = pneg %p2102_p10 }
 0x666   : > { %p2109_p4 = por %p2108_p0, %p2107_p9 }
 0x668   : > { %p2110_p8 = pnand %p2109_p4, %p2103_p7 }
 0x66a   : > { %2113 = shalt.err (!%p2110_p8)
}
 0x66b   : > { %s2203_s20 = smov 128  }
 0x66c   : > { %1812 = dma.vmem_to_hbm [thread:$0]  (%p2696_p2), %s2597_s3, 256, %s2602_s29, %s1459_s17, %s2203_s20, %s2203_s20, %s2199_s9  }
 0x66d PF: > { %s2697_s13 = sld [smem:[#allocation19_spill]]  ;;  %s2698_s0 = sld [smem:[#allocation20_spill]] }
 0x66e   : > { %p2700_p13 = scmp.ge.s32.totalorder %s2180_s26, 2 }
 0x673   : > { %s1489_s7 = sand.u32 1, %s2697_s13   ;;  %p2699_p1 = scmp.ne.s32.totalorder %s2698_s0, 0 }
 0x674   : > { %s1490_s21 = scalar_lea.sflag [#allocation6], %s1489_s7 }
 0x675   : > { %p1832_p3 = pnand %p2700_p13, %p2699_p1 }
 0x677   : > { %2155 = dma.done.wait (!%p1832_p3), %s1490_s21, 256  }
 0x678   : > { %2157 = vsyncadd (!%p1832_p3), %s1490_s21, 4294967040  ;;  %s26_s26 = sadd.s32 1, %s2180_s26   ;;  %s2701_s21 = smov %s2164_s22 }
 0x679   : > { %p23_p5 = scmp.ge.s32.totalorder %s26_s26, 4   ;;  %s2702_s22 = smov %s2168_s23 }
 0x67a   : > { %s2703_s23 = smov %s2410_s19  ;;  %s2704_s24 = smov %s2176_s25 }
 0x67b   : > { %s2705_s25 = smov %s2707_s10  ;;  %25 = sbr.rel (!%p23_p5) target bundleno = 14 (0xe), region = 118 }
 0x682   :  { %1495 = vsyncpa [#allocation5], 1 }
 0x683   :  { %1497 = vsyncpa [#allocation5 + $0x1], 1 }
 0x684   :  { %1498 = vsyncpa [#allocation8], 1 }
 0x685   :  { %1500 = vsyncpa [#allocation8 + $0x1], 1 }
 0x686   :  { %1501 = vsyncpa [#allocation11], 1 }
 0x687   :  { %1502 = vsyncpa [#allocation6], 1 }
 0x688   :  { %1504 = vsyncpa [#allocation6 + $0x1], 1 }

</bundles_post_ra>
